<compile_context>
chip_gen: v7x
topology: tpu7x:2x2x1
jax: 0.10.0
libtpu: 0.0.40
codegen_flags: <defaults>
</compile_context>

<pallas_src>
import functools

import numpy as np
import jax
import jax.numpy as jnp
from jax.experimental import pallas as pl
from jax.experimental.pallas import tpu as pltpu


def _cdiv(a, b):
    return -(-a // b)


def _round_up(x, m):
    return ((x + m - 1) // m) * m


def _tt_lmn_kernel(x_ref, a_ref, ab_ref, bm_ref, u_ref, bo_ref, o_ref, *,
                   n_ch, n_aggr, out_size):
    """One batch-tile grid cell; all heads processed in-kernel.

    x_ref : (n_ch, TB, in_size)        children on the leading axis (bf16/f32)
    a_ref : (n_aggr, in_size, rank)    A          (VMEM-resident, all heads)
    ab_ref: (n_aggr, 1, rank)          A_b  (f32)
    bm_ref: (n_aggr, rank, rank)       B
    u_ref : (n_aggr, rank, out_size)   U_output
    bo_ref: (n_aggr, 1, out_size)      b_output (f32)
    o_ref : (TB, n_aggr*out_size)      final-layout output tile (f32)
    """
    _, tb, in_size = x_ref.shape
    # Fused child projection operand: one (n_ch*TB, in_size) slab. TB is a
    # multiple of 16, so merging the leading dim is sublane/tile aligned.
    x_all = x_ref[...].reshape(n_ch * tb, in_size)

    for a in range(n_aggr):  # small & static -> unrolled, chains interleave
        # (n_ch*TB, in_size) @ (in_size, rank) on the MXU, f32 accumulation.
        ax = (jnp.dot(x_all, a_ref[a], preferred_element_type=jnp.float32)
              + ab_ref[a])                                  # (n_ch*TB, rank)
        Bm = bm_ref[a]
        v = ax[0:tb]
        for i in range(1, n_ch):                            # tensor-train chain
            v = (jnp.dot(v.astype(Bm.dtype), Bm,
                         preferred_element_type=jnp.float32)
                 + ax[i * tb:(i + 1) * tb])
        U = u_ref[a]
        out_a = (jnp.dot(v.astype(U.dtype), U,
                         preferred_element_type=jnp.float32)
                 + bo_ref[a])                               # (TB, out_size)
        # Head-major placement inside the lane-dense output tile (matches
        # torch's out.view(bs, -1)).
        o_ref[:, a * out_size:(a + 1) * out_size] = out_a.astype(o_ref.dtype)


def tensor_train_lmn(batched_in_el, A, A_b, B, U_output, b_output, *,
                     block_bs=1024, min_tiles=1,
                     compute_dtype=jnp.bfloat16):
    """JAX wrapper reproducing TensorTrainLMN.forward (pos_stationarity=True,
    type_embs=None, mask unused)."""
    bs, n_ch, in_size = batched_in_el.shape
    n_aggr, in_size_a, rank = A.shape
    assert in_size_a == in_size
    assert B.shape == (n_aggr, rank, rank)
    assert A_b.shape == (n_aggr, 1, rank)
    out_size = U_output.shape[-1]
    assert U_output.shape == (n_aggr, rank, out_size)
    assert b_output.shape == (n_aggr, 1, out_size)

    # Few, fat batch tiles: amortize the ~600-cycle grid-step overhead.
    # TB is a multiple of 16 (bf16 sublane packing); padding <= 15 rows.
    num_tiles = max(min_tiles, _cdiv(bs, block_bs))
    TB = _round_up(_cdiv(bs, num_tiles), 16)
    bs_p = num_tiles * TB

    # Children on the leading axis so per-child rows are sublane-contiguous
    # and the x block's last two dims (TB, in_size) are tile-legal.
    xt = jnp.transpose(batched_in_el, (1, 0, 2)).astype(compute_dtype)
    if bs_p != bs:
        xt = jnp.pad(xt, ((0, 0), (0, bs_p - bs), (0, 0)))

    # bf16 matmul operands on the MXU, f32 accumulation in-kernel; biases are
    # add-only and tiny, so they stay f32.
    A_c = A.astype(compute_dtype)
    B_c = B.astype(compute_dtype)
    U_c = U_output.astype(compute_dtype)
    A_b_f = A_b.astype(jnp.float32)
    b_o_f = b_output.astype(jnp.float32)

    out_w = n_aggr * out_size
    kernel = functools.partial(_tt_lmn_kernel, n_ch=n_ch, n_aggr=n_aggr,
                               out_size=out_size)

    flops = 2 * bs_p * n_aggr * (n_ch * in_size * rank
                                 + (n_ch - 1) * rank * rank
                                 + rank * out_size)
    bytes_accessed = (int(xt.size) * xt.dtype.itemsize
                      + sum(int(w.size) * w.dtype.itemsize
                            for w in (A_c, B_c, U_c, A_b_f, b_o_f))
                      + bs_p * out_w * 4)

    out = pl.pallas_call(
        kernel,
        out_shape=jax.ShapeDtypeStruct((bs_p, out_w), jnp.float32),
        grid=(num_tiles,),
        in_specs=[
            # x tile streams per grid step (double-buffered by BlockSpec).
            pl.BlockSpec((n_ch, TB, in_size), lambda b: (0, b, 0)),
            # All per-head weights stay VMEM-resident across the whole grid.
            pl.BlockSpec((n_aggr, in_size, rank), lambda b: (0, 0, 0)),
            pl.BlockSpec((n_aggr, 1, rank), lambda b: (0, 0, 0)),
            pl.BlockSpec((n_aggr, rank, rank), lambda b: (0, 0, 0)),
            pl.BlockSpec((n_aggr, rank, out_size), lambda b: (0, 0, 0)),
            pl.BlockSpec((n_aggr, 1, out_size), lambda b: (0, 0, 0)),
        ],
        # Lane-dense, final-layout output: one (TB, n_aggr*out_size) block per
        # tile; no wrapper-side transpose/reshape afterwards.
        out_specs=pl.BlockSpec((TB, out_w), lambda b: (b, 0)),
        compiler_params=pltpu.CompilerParams(
            dimension_semantics=("parallel",)),
        cost_estimate=pl.CostEstimate(flops=flops, transcendentals=0,
                                      bytes_accessed=bytes_accessed),
    )(xt, A_c, A_b_f, B_c, U_c, b_o_f)

    return out[:bs]


def xavier_uniform(key, shape):
    """Deterministic Xavier-uniform matching torch's fan computation."""
    receptive = int(np.prod(shape[2:])) if len(shape) > 2 else 1
    fan_in = shape[1] * receptive
    fan_out = shape[0] * receptive
    bound = float(np.sqrt(6.0 / (fan_in + fan_out)))
    return jax.random.uniform(key, shape, jnp.float32, -bound, bound)


if __name__ == "__main__":
    # TensorTrainLMN(in_size=16, out_size=8, rank=32, pos_stationarity=True,
    #                max_output_degree=3, n_aggr=2); bs=37 exercises multiple
    # batch tiles + padding with a small block_bs.
    bs, n_ch, in_size = 37, 3, 16
    rank, out_size, n_aggr = 32, 8, 2

    key = jax.random.PRNGKey(0)
    k_x, k_a, k_ab, k_b, k_u, k_bo = jax.random.split(key, 6)
    x = jax.random.normal(k_x, (bs, n_ch, in_size), jnp.float32)
    A = xavier_uniform(k_a, (n_aggr, in_size, rank))
    A_b = xavier_uniform(k_ab, (n_aggr, 1, rank))
    B = xavier_uniform(k_b, (n_aggr, rank, rank))
    U_output = xavier_uniform(k_u, (n_aggr, rank, out_size))
    b_output = xavier_uniform(k_bo, (n_aggr, 1, out_size))

    # Pure-JAX f32 reference mirroring the PyTorch op chain.
    ax = jnp.einsum("bci,air->bcar", x, A) + A_b[:, 0, :][None, None]
    v = ax[:, 0]                                            # (bs, n_aggr, rank)
    for i in range(1, n_ch):
        v = jnp.einsum("bar,arq->baq", v, B) + ax[:, i]
    ref = jnp.einsum("bar,aro->bao", v, U_output) + b_output[:, 0, :][None]
    ref = ref.reshape(bs, -1)

    # Strict correctness check: f32 compute path.
    out_f32 = tensor_train_lmn(x, A, A_b, B, U_output, b_output,
                               block_bs=16, compute_dtype=jnp.float32)
    out_f32 = jax.block_until_ready(out_f32)
    assert out_f32.shape == (bs, n_aggr * out_size), out_f32.shape
    assert jnp.allclose(out_f32, ref, atol=1e-4, rtol=1e-4), \
        float(jnp.max(jnp.abs(out_f32 - ref)))

    # Default (bf16 MXU, f32 accumulation) path: loosened tolerance.
    out_bf16 = tensor_train_lmn(x, A, A_b, B, U_output, b_output, block_bs=16)
    out_bf16 = jax.block_until_ready(out_bf16)
    assert out_bf16.shape == (bs, n_aggr * out_size), out_bf16.shape
    assert jnp.allclose(out_bf16, ref, atol=5e-2, rtol=5e-2), \
        float(jnp.max(jnp.abs(out_bf16 - ref)))

    print("KERNEL_OK")
</pallas_src>

<mosaic_0001>
module attributes {stable_mosaic.version = 11 : i64} {
  func.func @_tt_lmn_kernel(%arg0: i32, %arg1: memref<3x16x16xf32, #tpu.memory_space<vmem>>, %arg2: memref<2x16x32xf32, #tpu.memory_space<vmem>>, %arg3: memref<2x1x32xf32, #tpu.memory_space<vmem>>, %arg4: memref<2x32x32xf32, #tpu.memory_space<vmem>>, %arg5: memref<2x32x8xf32, #tpu.memory_space<vmem>>, %arg6: memref<2x1x8xf32, #tpu.memory_space<vmem>>, %arg7: memref<16x16xf32, #tpu.memory_space<vmem>>) attributes {dimension_semantics = [#tpu.dimension_semantics<parallel>], iteration_bounds = array<i64: 3>, scalar_prefetch = 0 : i64, scratch_operands = 0 : i64, tpu.core_type = #tpu.core_type<tc>, window_params = [{transform_indices = @transform_0, window_bounds = array<i64: 3, 16, 16>}, {pipeline_mode = #tpu.pipeline_mode<synchronous>, transform_indices = @transform_1, window_bounds = array<i64: 2, 16, 32>}, {pipeline_mode = #tpu.pipeline_mode<synchronous>, transform_indices = @transform_2, window_bounds = array<i64: 2, 1, 32>}, {pipeline_mode = #tpu.pipeline_mode<synchronous>, transform_indices = @transform_3, window_bounds = array<i64: 2, 32, 32>}, {pipeline_mode = #tpu.pipeline_mode<synchronous>, transform_indices = @transform_4, window_bounds = array<i64: 2, 32, 8>}, {pipeline_mode = #tpu.pipeline_mode<synchronous>, transform_indices = @transform_5, window_bounds = array<i64: 2, 1, 8>}, {transform_indices = @transform_6, window_bounds = array<i64: 16, 16>}]} {
    %c0 = arith.constant 0 : index
    %c0_0 = arith.constant 0 : index
    %c0_1 = arith.constant 0 : index
    %0 = vector.load %arg1[%c0, %c0_0, %c0_1] : memref<3x16x16xf32, #tpu.memory_space<vmem>>, vector<3x16x16xf32>
    %1 = vector.shape_cast %0 : vector<3x16x16xf32> to vector<48x16xf32>
    %c0_2 = arith.constant 0 : index
    %c0_3 = arith.constant 0 : index
    %c0_4 = arith.constant 0 : index
    %2 = vector.load %arg2[%c0_2, %c0_3, %c0_4] : memref<2x16x32xf32, #tpu.memory_space<vmem>>, vector<1x16x32xf32>
    %3 = vector.shape_cast %2 : vector<1x16x32xf32> to vector<16x32xf32>
    %cst = arith.constant dense<0.000000e+00> : vector<48x32xf32>
    %4 = tpu.matmul %1, %3, %cst {dimension_numbers = #tpu.dot_dimension_numbers<[1], [0], [0], [1], [0, 0, 1, 1], [], []>} : vector<48x16xf32>, vector<16x32xf32>, vector<48x32xf32> -> vector<48x32xf32>
    %c0_5 = arith.constant 0 : index
    %c0_6 = arith.constant 0 : index
    %c0_7 = arith.constant 0 : index
    %5 = vector.load %arg3[%c0_5, %c0_6, %c0_7] : memref<2x1x32xf32, #tpu.memory_space<vmem>>, vector<1x1x32xf32>
    %6 = vector.shape_cast %5 : vector<1x1x32xf32> to vector<1x32xf32>
    %7 = vector.broadcast %6 : vector<1x32xf32> to vector<48x32xf32>
    %8 = arith.addf %4, %7 : vector<48x32xf32>
    %c0_8 = arith.constant 0 : index
    %c0_9 = arith.constant 0 : index
    %c0_10 = arith.constant 0 : index
    %9 = vector.load %arg4[%c0_8, %c0_9, %c0_10] : memref<2x32x32xf32, #tpu.memory_space<vmem>>, vector<1x32x32xf32>
    %10 = vector.shape_cast %9 : vector<1x32x32xf32> to vector<32x32xf32>
    %11 = vector.extract_strided_slice %8 {offsets = [0, 0], sizes = [16, 32], strides = [1, 1]} : vector<48x32xf32> to vector<16x32xf32>
    %cst_11 = arith.constant dense<0.000000e+00> : vector<16x32xf32>
    %12 = tpu.matmul %11, %10, %cst_11 {dimension_numbers = #tpu.dot_dimension_numbers<[1], [0], [0], [1], [0, 0, 1, 1], [], []>} : vector<16x32xf32>, vector<32x32xf32>, vector<16x32xf32> -> vector<16x32xf32>
    %13 = vector.extract_strided_slice %8 {offsets = [16, 0], sizes = [16, 32], strides = [1, 1]} : vector<48x32xf32> to vector<16x32xf32>
    %14 = arith.addf %12, %13 : vector<16x32xf32>
    %cst_12 = arith.constant dense<0.000000e+00> : vector<16x32xf32>
    %15 = tpu.matmul %14, %10, %cst_12 {dimension_numbers = #tpu.dot_dimension_numbers<[1], [0], [0], [1], [0, 0, 1, 1], [], []>} : vector<16x32xf32>, vector<32x32xf32>, vector<16x32xf32> -> vector<16x32xf32>
    %16 = vector.extract_strided_slice %8 {offsets = [32, 0], sizes = [16, 32], strides = [1, 1]} : vector<48x32xf32> to vector<16x32xf32>
    %17 = arith.addf %15, %16 : vector<16x32xf32>
    %c0_13 = arith.constant 0 : index
    %c0_14 = arith.constant 0 : index
    %c0_15 = arith.constant 0 : index
    %18 = vector.load %arg5[%c0_13, %c0_14, %c0_15] : memref<2x32x8xf32, #tpu.memory_space<vmem>>, vector<1x32x8xf32>
    %19 = vector.shape_cast %18 : vector<1x32x8xf32> to vector<32x8xf32>
    %cst_16 = arith.constant dense<0.000000e+00> : vector<16x8xf32>
    %20 = tpu.matmul %17, %19, %cst_16 {dimension_numbers = #tpu.dot_dimension_numbers<[1], [0], [0], [1], [0, 0, 1, 1], [], []>} : vector<16x32xf32>, vector<32x8xf32>, vector<16x8xf32> -> vector<16x8xf32>
    %c0_17 = arith.constant 0 : index
    %c0_18 = arith.constant 0 : index
    %c0_19 = arith.constant 0 : index
    %21 = vector.load %arg6[%c0_17, %c0_18, %c0_19] : memref<2x1x8xf32, #tpu.memory_space<vmem>>, vector<1x1x8xf32>
    %22 = vector.shape_cast %21 : vector<1x1x8xf32> to vector<1x8xf32>
    %23 = vector.broadcast %22 : vector<1x8xf32> to vector<16x8xf32>
    %24 = arith.addf %20, %23 : vector<16x8xf32>
    %c0_20 = arith.constant 0 : index
    %c0_21 = arith.constant 0 : index
    %25 = vector.load %arg7[%c0_20, %c0_21] : memref<16x16xf32, #tpu.memory_space<vmem>>, vector<16x8xf32>
    tpu.vector_store %arg7[%c0_20, %c0_21], %24 {strides = array<i32>} : memref<16x16xf32, #tpu.memory_space<vmem>>, vector<16x8xf32>,
    %c1 = arith.constant 1 : index
    %c0_22 = arith.constant 0 : index
    %c0_23 = arith.constant 0 : index
    %26 = vector.load %arg2[%c1, %c0_22, %c0_23] : memref<2x16x32xf32, #tpu.memory_space<vmem>>, vector<1x16x32xf32>
    %27 = vector.shape_cast %26 : vector<1x16x32xf32> to vector<16x32xf32>
    %cst_24 = arith.constant dense<0.000000e+00> : vector<48x32xf32>
    %28 = tpu.matmul %1, %27, %cst_24 {dimension_numbers = #tpu.dot_dimension_numbers<[1], [0], [0], [1], [0, 0, 1, 1], [], []>} : vector<48x16xf32>, vector<16x32xf32>, vector<48x32xf32> -> vector<48x32xf32>
    %c1_25 = arith.constant 1 : index
    %c0_26 = arith.constant 0 : index
    %c0_27 = arith.constant 0 : index
    %29 = vector.load %arg3[%c1_25, %c0_26, %c0_27] : memref<2x1x32xf32, #tpu.memory_space<vmem>>, vector<1x1x32xf32>
    %30 = vector.shape_cast %29 : vector<1x1x32xf32> to vector<1x32xf32>
    %31 = vector.broadcast %30 : vector<1x32xf32> to vector<48x32xf32>
    %32 = arith.addf %28, %31 : vector<48x32xf32>
    %c1_28 = arith.constant 1 : index
    %c0_29 = arith.constant 0 : index
    %c0_30 = arith.constant 0 : index
    %33 = vector.load %arg4[%c1_28, %c0_29, %c0_30] : memref<2x32x32xf32, #tpu.memory_space<vmem>>, vector<1x32x32xf32>
    %34 = vector.shape_cast %33 : vector<1x32x32xf32> to vector<32x32xf32>
    %35 = vector.extract_strided_slice %32 {offsets = [0, 0], sizes = [16, 32], strides = [1, 1]} : vector<48x32xf32> to vector<16x32xf32>
    %cst_31 = arith.constant dense<0.000000e+00> : vector<16x32xf32>
    %36 = tpu.matmul %35, %34, %cst_31 {dimension_numbers = #tpu.dot_dimension_numbers<[1], [0], [0], [1], [0, 0, 1, 1], [], []>} : vector<16x32xf32>, vector<32x32xf32>, vector<16x32xf32> -> vector<16x32xf32>
    %37 = vector.extract_strided_slice %32 {offsets = [16, 0], sizes = [16, 32], strides = [1, 1]} : vector<48x32xf32> to vector<16x32xf32>
    %38 = arith.addf %36, %37 : vector<16x32xf32>
    %cst_32 = arith.constant dense<0.000000e+00> : vector<16x32xf32>
    %39 = tpu.matmul %38, %34, %cst_32 {dimension_numbers = #tpu.dot_dimension_numbers<[1], [0], [0], [1], [0, 0, 1, 1], [], []>} : vector<16x32xf32>, vector<32x32xf32>, vector<16x32xf32> -> vector<16x32xf32>
    %40 = vector.extract_strided_slice %32 {offsets = [32, 0], sizes = [16, 32], strides = [1, 1]} : vector<48x32xf32> to vector<16x32xf32>
    %41 = arith.addf %39, %40 : vector<16x32xf32>
    %c1_33 = arith.constant 1 : index
    %c0_34 = arith.constant 0 : index
    %c0_35 = arith.constant 0 : index
    %42 = vector.load %arg5[%c1_33, %c0_34, %c0_35] : memref<2x32x8xf32, #tpu.memory_space<vmem>>, vector<1x32x8xf32>
    %43 = vector.shape_cast %42 : vector<1x32x8xf32> to vector<32x8xf32>
    %cst_36 = arith.constant dense<0.000000e+00> : vector<16x8xf32>
    %44 = tpu.matmul %41, %43, %cst_36 {dimension_numbers = #tpu.dot_dimension_numbers<[1], [0], [0], [1], [0, 0, 1, 1], [], []>} : vector<16x32xf32>, vector<32x8xf32>, vector<16x8xf32> -> vector<16x8xf32>
    %c1_37 = arith.constant 1 : index
    %c0_38 = arith.constant 0 : index
    %c0_39 = arith.constant 0 : index
    %45 = vector.load %arg6[%c1_37, %c0_38, %c0_39] : memref<2x1x8xf32, #tpu.memory_space<vmem>>, vector<1x1x8xf32>
    %46 = vector.shape_cast %45 : vector<1x1x8xf32> to vector<1x8xf32>
    %47 = vector.broadcast %46 : vector<1x8xf32> to vector<16x8xf32>
    %48 = arith.addf %44, %47 : vector<16x8xf32>
    %c0_40 = arith.constant 0 : index
    %c8 = arith.constant 8 : index
    %49 = vector.load %arg7[%c0_40, %c8] : memref<16x16xf32, #tpu.memory_space<vmem>>, vector<16x8xf32>
    tpu.vector_store %arg7[%c0_40, %c8], %48 {strides = array<i32>} : memref<16x16xf32, #tpu.memory_space<vmem>>, vector<16x8xf32>,
    return
  }
  func.func @transform_0(%arg0: i32) -> (i32, i32, i32) {
    %c0_i32 = arith.constant 0 : i32
    %c0_i32_0 = arith.constant 0 : i32
    %c0_i32_1 = arith.constant 0 : i32
    return %c0_i32, %arg0, %c0_i32_0 : i32, i32, i32
  }
  func.func @transform_1(%arg0: i32) -> (i32, i32, i32) {
    %c0_i32 = arith.constant 0 : i32
    %c0_i32_0 = arith.constant 0 : i32
    %c0_i32_1 = arith.constant 0 : i32
    %c0_i32_2 = arith.constant 0 : i32
    return %c0_i32, %c0_i32_0, %c0_i32_1 : i32, i32, i32
  }
  func.func @transform_2(%arg0: i32) -> (i32, i32, i32) {
    %c0_i32 = arith.constant 0 : i32
    %c0_i32_0 = arith.constant 0 : i32
    %c0_i32_1 = arith.constant 0 : i32
    %c0_i32_2 = arith.constant 0 : i32
    return %c0_i32, %c0_i32_0, %c0_i32_1 : i32, i32, i32
  }
  func.func @transform_3(%arg0: i32) -> (i32, i32, i32) {
    %c0_i32 = arith.constant 0 : i32
    %c0_i32_0 = arith.constant 0 : i32
    %c0_i32_1 = arith.constant 0 : i32
    %c0_i32_2 = arith.constant 0 : i32
    return %c0_i32, %c0_i32_0, %c0_i32_1 : i32, i32, i32
  }
  func.func @transform_4(%arg0: i32) -> (i32, i32, i32) {
    %c0_i32 = arith.constant 0 : i32
    %c0_i32_0 = arith.constant 0 : i32
    %c0_i32_1 = arith.constant 0 : i32
    %c0_i32_2 = arith.constant 0 : i32
    return %c0_i32, %c0_i32_0, %c0_i32_1 : i32, i32, i32
  }
  func.func @transform_5(%arg0: i32) -> (i32, i32, i32) {
    %c0_i32 = arith.constant 0 : i32
    %c0_i32_0 = arith.constant 0 : i32
    %c0_i32_1 = arith.constant 0 : i32
    %c0_i32_2 = arith.constant 0 : i32
    return %c0_i32, %c0_i32_0, %c0_i32_1 : i32, i32, i32
  }
  func.func @transform_6(%arg0: i32) -> (i32, i32) {
    %c0_i32 = arith.constant 0 : i32
    %c0_i32_0 = arith.constant 0 : i32
    return %arg0, %c0_i32 : i32, i32
  }
}

</mosaic_0001>

<bundles_post_ra>
// kernel: tpu_custom_call.1
= control target key start
LH: loop header
LB: loop body
LE: loop exit
PB: predicated region body
PF: predicated region fallthrough
CT: control target
= control target key end

     0   :  { %s1495_s21 = smov 0   ;;  %s1497_s22 = smov 0   ;;  %s1649_s0 = inlined_call_operand.vmem [shape: f32[3,48,16], index: 0, kind: input, shape index: {}]   ;;  %s1650_s1 = inlined_call_operand.vmem [shape: f32[2,16,32], index: 1, kind: input, shape index: {}]   ;;  %s1651_s2 = inlined_call_operand.vmem [shape: f32[2,1,32], index: 2, kind: input, shape index: {}]   ;;  %s1652_s3 = inlined_call_operand.vmem [shape: f32[2,32,32], index: 3, kind: input, shape index: {}]   ;;  %s1653_s4 = inlined_call_operand.vmem [shape: f32[2,32,8], index: 4, kind: input, shape index: {}]   ;;  %s1654_s5 = inlined_call_operand.vmem [shape: f32[2,1,8], index: 5, kind: input, shape index: {}]   ;;  %s1655_s6 = inlined_call_operand.vmem [shape: f32[48,16], index: 6, kind: output, shape index: {}]  }
   0x1   :  { %s1499_s23 = smov 0  }
   0x2 LB: > { %s1140_s24 = sadd.s32 4294967295, %s1457_s23   ;;  %s1512_s25 = sadd.s32 1, %s1457_s23   ;;  %s1457_s23 = sphi %s1499_s23, %s1658_s23   ;;  %s1453_s22 = sphi %s1497_s22, %s1657_s22   ;;  %s1449_s21 = sphi %s1495_s21, %s1656_s21  }
   0x3   : > { %s20_s26 = ssub.s32 %s1457_s23, %s1512_s25  ;;  %s23_s27 = sadd.s32 1, %s1453_s22 }
   0x4   : > { %p21_p0 = scmp.eq.s32.totalorder %s20_s26, 0  ;;  %p30_p1 = scmp.ne.s32.totalorder %s1453_s22, %s1449_s21 }
   0x5   : > { %p31_p2 = scmp.eq.s32.totalorder %s1457_s23, 0  ;;  %p1143_p4 = scmp.ge.s32.totalorder %s1457_s23, 3 }
   0x6   : > { %s1521_s28 = scalar_select %p21_p0, %s1453_s22, %s23_s27  }
   0x7   : > { %p32_p3 = por %p31_p2, %p30_p1  ;;  %202 = sbr.rel (%p1143_p4) target bundleno = 22 (0x16), region = 36 }
   0xe   : > { %205 = sbr.rel (!%p32_p3) target bundleno = 22 (0x16), region = 40  ;;  %s207_s29 = sand.u32 (%p32_p3), 1, %s1453_s22  }
   0xf   : > { %s1191_s30 = sshll.u32 (%p32_p3), %s1457_s23, 4  ;;  %s1408_s7 = smul.u32 (%p32_p3), 48, %s207_s29 }
  0x10   : > { %s212_s10 = scalar_lea.vmem (%p32_p3), %s1649_s0, %s1191_s30 }
  0x11   : > { %v250_v0 = vld [vmem:[%s212_s10] sm:$0xff] (%p32_p3)  ;;  %v252_v1 = vld [vmem:[%s212_s10 + $0x8] sm:$0xff] (%p32_p3)  ;;  %v254_v2 = vld [vmem:[%s212_s10 + $0x30] sm:$0xff] (%p32_p3)  ;;  %s209_s11 = scalar_lea.vmem (%p32_p3), [#allocation2], %s1408_s7 }
  0x12   : > { %v256_v3 = vld [vmem:[%s212_s10 + $0x38] sm:$0xff] (%p32_p3)  ;;  %v258_v4 = vld [vmem:[%s212_s10 + $0x60] sm:$0xff] (%p32_p3)  ;;  %v260_v5 = vld [vmem:[%s212_s10 + $0x68] sm:$0xff] (%p32_p3)  ;;  %251 = vst [vmem:[%s209_s11] sm:$0xff] (%p32_p3), %v250_v0 }
  0x13   : > { %253 = vst [vmem:[%s209_s11 + $0x8] sm:$0xff] (%p32_p3), %v252_v1  ;;  %255 = vst [vmem:[%s209_s11 + $0x10] sm:$0xff] (%p32_p3), %v254_v2 }
  0x14   : > { %257 = vst [vmem:[%s209_s11 + $0x18] sm:$0xff] (%p32_p3), %v256_v3  ;;  %259 = vst [vmem:[%s209_s11 + $0x20] sm:$0xff] (%p32_p3), %v258_v4 }
  0x15   : > { %261 = vst [vmem:[%s209_s11 + $0x28] sm:$0xff] %v260_v5 }
  0x16 PF: > { %p1146_p5 = scmp.ge.s32.totalorder %s1457_s23, 1  ;;  %p266_p6 = scmp.lt.s32.totalorder %s1457_s23, 4 }
  0x18   : > { %p267_p7 = pnand %p1146_p5, %p266_p6 }
  0x19   : > { %v315_v6 = vld [vmem:[%s1650_s1] sm:$0xff] (!%p267_p7)  ;;  %v316_v7 = vld [vmem:[%s1650_s1 + $0x8] sm:$0xff] (!%p267_p7)  ;;  %s273_s16 = sand.u32 (!%p267_p7), 1, %s1449_s21   ;;  %vm324_vm0 = vcmask (!%p267_p7), 130048   ;;  %v440_v12 = vld [vmem:[%s1652_s3 + $0x10] sm:$0xff] (!%p267_p7)  ;;  %vm442_vm1 = vcmask (!%p267_p7), 261120  }
  0x1a   : > { %270 = sbr.rel (%p267_p7) target bundleno = 1667 (0x683), region = 78  ;;  %v438_v8 = vld [vmem:[%s1652_s3] sm:$0xff] (!%p267_p7)  ;;  %v1336_v9 = vpack.c.bf16 (!%p267_p7), %v316_v7, %v315_v6  ;;  %v439_v10 = vld [vmem:[%s1652_s3 + $0x8] sm:$0xff] (!%p267_p7)  ;;  %v441_v13 = vld [vmem:[%s1652_s3 + $0x18] sm:$0xff] (!%p267_p7)  ;;  %s1147_s11 = sshll.u32 (!%p267_p7), %s1140_s24, 1  ;;  %vm697_vm2 = vcmask (!%p267_p7), 64512  }
  0x1b   : > { %s1409_s19 = smul.u32 (!%p267_p7), 48, %s273_s16  ;;  %v1340_v11 = vpack.c.bf16 (!%p267_p7), %v439_v10, %v438_v8  ;;  %v1344_v17 = vpack.c.bf16 (!%p267_p7), %v441_v13, %v440_v12  ;;  %v1149_v21 = vld [vmem:[%s1651_s2] ss:$0 sm:$0xff] (!%p267_p7)  ;;  %v606_v27 = vld [vmem:[%s1653_s4 + $0x8] sm:$0xff] (!%p267_p7)  ;;  %v607_v33 = vld [vmem:[%s1653_s4 + $0x10] sm:$0xff] (!%p267_p7)  ;;  %p304_p8 = scmp.lt.s32.totalorder (!%p267_p7), %s1147_s11, 5 }
  0x1c   : > { %1337 = vmatprep.subr.bf16.mxu0 (!%p267_p7), %v1336_v9  ;;  %v605_v26 = vld [vmem:[%s1653_s4] sm:$0xff] (!%p267_p7)  ;;  %v608_v34 = vld [vmem:[%s1653_s4 + $0x18] sm:$0xff] (!%p267_p7)  ;;  %v1163_v36 = vld [vmem:[%s1650_s1 + $0x10] sm:$0xff] (!%p267_p7)  ;;  %s1459_s9 = smov (!%p267_p7), 8   ;;  %vm1075_vm3 = vcmask (!%p267_p7), 130112  }
  0x1d   : > { %1339 = vmatpush3.bf16.msra.mxu0 (!%p267_p7), %v1336_v9  ;;  %s275_s21 = scalar_lea.vmem (!%p267_p7), [#allocation2], %s1409_s19  ;;  %v1356_v28 = vpack.c.bf16 (!%p267_p7), %v606_v27, %v605_v26  ;;  %v1360_v35 = vpack.c.bf16 (!%p267_p7), %v608_v34, %v607_v33  ;;  %v1164_v37 = vld [vmem:[%s1650_s1 + $0x18] sm:$0xff] (!%p267_p7)  ;;  %v1173_v40 = vld [vmem:[%s1652_s3 + $0x20] sm:$0xff] (!%p267_p7)  ;;  %v1174_v41 = vld [vmem:[%s1652_s3 + $0x28] sm:$0xff] (!%p267_p7) }
  0x1e   : > { %v309_v14 = vld [vmem:[%s275_s21] sm:$0xff] (!%p267_p7)  ;;  %v310_v15 = vld [vmem:[%s275_s21 + $0x8] sm:$0xff] (!%p267_p7)  ;;  %1341 = vmatprep.subr.bf16.mxu0 (!%p267_p7), %v1340_v11  ;;  %v311_v16 = vld [vmem:[%s275_s21 + $0x10] sm:$0xff] (!%p267_p7)  ;;  %v1364_v38 = vpack.c.bf16 (!%p267_p7), %v1164_v37, %v1163_v36  ;;  %v1368_v45 = vpack.c.bf16 (!%p267_p7), %v1174_v41, %v1173_v40 }
  0x1f   : > { %1248 = vmatprep.mubr.msk.f32.mxu0 (!%p267_p7), %vm324_vm0, %v309_v14  ;;  %v312_v18 = vld [vmem:[%s275_s21 + $0x18] sm:$0xff] (!%p267_p7)  ;;  %v313_v19 = vld [vmem:[%s275_s21 + $0x20] sm:$0xff] (!%p267_p7)  ;;  %v314_v20 = vld [vmem:[%s275_s21 + $0x28] sm:$0xff] (!%p267_p7)  ;;  %1357 = vmatprep.subr.bf16.mxu1 (!%p267_p7), %v1356_v28 }
  0x20   : > { %1249 = vmatmul.mubr.msk.f32.vlgmr.msra.gmra.mrb[0].mxu0 (!%p267_p7), %vm324_vm0, %v310_v15  ;;  %1359 = vmatpush3.bf16.msra.mxu1 (!%p267_p7), %v1356_v28  ;;  %v1175_v46 = vld [vmem:[%s1652_s3 + $0x30] sm:$0xff] (!%p267_p7)  ;;  %v1176_v47 = vld [vmem:[%s1652_s3 + $0x38] sm:$0xff] (!%p267_p7)  ;;  %v1160_v49 = vld [vmem:[%s1654_s5] ss:$0 sm:$0xff] (!%p267_p7) }
  0x21   : > { %1343 = vmatpush3.bf16.msra.mxu0 %v1340_v11  ;;  %1251 = vmatprep.mubr.msk.f32.mxu0 %vm324_vm0, %v311_v16  ;;  %v1372_v48 = vpack.c.bf16 %v1176_v47, %v1175_v46  ;;  %s1660_s11 = smov (!%p304_p8, %s1147_s11), 5  ;;  %v1166_v54 = vld [vmem:[%s1651_s2 + $0x1] ss:$0 sm:$0xff]  ;;  %v1182_v60 = vld [vmem:[%s1653_s4 + $0x28] sm:$0xff]  ;;  %v1183_v2 = vld [vmem:[%s1653_s4 + $0x30] sm:$0xff] }
  0x22   : > { %1345 = vmatprep.subr.bf16.mxu0 %v1344_v17  ;;  %1361 = vmatprep.subr.bf16.mxu1 %v1360_v35  ;;  %s1148_s12 = sshll.u32 %s1660_s11, 3  ;;  %v1181_v59 = vld [vmem:[%s1653_s4 + $0x20] sm:$0xff]  ;;  %v1184_v3 = vld [vmem:[%s1653_s4 + $0x38] sm:$0xff] }
  0x23   : > { %s1609_s17 = scalar_lea.vmem %s1655_s6, %s1148_s12  ;;  %v1384_v61 = vpack.c.bf16 %v1182_v60, %v1181_v59  ;;  %v1388_v4 = vpack.c.bf16 %v1184_v3, %v1183_v2  ;;  %v1186_v9 = vld [vmem:[%s1654_s5 + $0x1] ss:$0 sm:$0xff] }
  0x24   : > { %1252 = vmatmul.mubr.msk.f32.gmra.mrb[2].mxu0 %vm324_vm0, %v312_v18  ;;  %1363 = vmatpush3.bf16.msra.mxu1 %v1360_v35 }
  0x25   : > { %1347 = vmatpush3.bf16.msra.mxu0 %v1344_v17  ;;  %1254 = vmatprep.mubr.msk.f32.mxu0 %vm324_vm0, %v313_v19 }
  0x26   : > { %1349 = vmatprep.subr.bf16.mxu0 %v1340_v11  ;;  %1365 = vmatprep.subr.bf16.mxu1 %v1364_v38 }
  0x28   : > { %1255 = vmatmul.mubr.msk.f32.gmra.mrb[4].mxu0 %vm324_vm0, %v314_v20 }
  0xf3   : > { %v1250_v22 = vpop.f32.mrb[0].mxu0 }
  0xf4   : > { %v409_v23 = vpop.f32.mrb[1].mxu0  ;;  %v415_v25 = vadd.f32 %v1250_v22, %v1149_v21 }
  0xf5   : > { %v410_v24 = vadd.f32 %v1149_v21, %v409_v23 }
  0xf7   : > { %1265 = vmatprep.mubr.msk.f32.mxu0 %vm442_vm1, %v410_v24 }
  0xf8   : > { %1266 = vmatmul.mubr.msk.f32.vlgmr.msra.gmra.mrb[2].mxu0 %vm442_vm1, %v415_v25 }
  0xf9   : > { %1351 = vmatpush3.bf16.msra.mxu0 %v1340_v11 }
  0xfa   : > { %1353 = vmatprep.subr.bf16.mxu0 %v1344_v17 }
  0xfd   : > { %1355 = vmatpush3.bf16.msra.mxu0 %v1344_v17 }
  0xfe   : > { %1385 = vmatprep.subr.bf16.mxu0 %v1384_v61 }
 0x1cb   : > { %v1267_v29 = vpop.f32.mrb[2].mxu0 }
 0x1cc   : > { %v515_v30 = vpop.f32.mrb[3].mxu0  ;;  %v1392_v32 = vadd.f32 %v1267_v29, %v1149_v21 }
 0x1cd   : > { %v1393_v31 = vadd.f32 %v1149_v21, %v515_v30 }
 0x1cf   : > { %1276 = vmatprep.mubr.msk.f32.mxu0 %vm442_vm1, %v1393_v31 }
 0x1d0   : > { %1277 = vmatmul.mubr.msk.f32.vlgmr.msra.gmra.mrb[4].mxu0 %vm442_vm1, %v1392_v32 }
 0x1d1   : > { %1387 = vmatpush3.bf16.msra.mxu0 %v1384_v61 }
 0x1d2   : > { %1389 = vmatprep.subr.bf16.mxu0 %v1388_v4 }
 0x1d5   : > { %1391 = vmatpush3.bf16.msra.mxu0 %v1388_v4 }
 0x2a3   : > { %v1278_v39 = vpop.f32.mrb[4].mxu0 }
 0x2a4   : > { %v596_v42 = vpop.f32.mrb[5].mxu0  ;;  %v1394_v44 = vadd.f32 %v1278_v39, %v1149_v21 }
 0x2a5   : > { %v1395_v43 = vadd.f32 %v1149_v21, %v596_v42 }
 0x2a7   : > { %1287 = vmatprep.mubr.msk.f32.mxu1 %vm442_vm1, %v1395_v43 }
 0x2a8   : > { %1288 = vmatmul.mubr.msk.f32.vlgmr.msra.gmra.mrb[0].mxu1 %vm442_vm1, %v1394_v44 }
 0x2a9   : > { %1367 = vmatpush3.bf16.msra.mxu1 %v1364_v38  ;;  %1294 = vmatprep.mubr.msk.f32.mxu1 %vm324_vm0, %v309_v14 }
 0x2aa   : > { %1369 = vmatprep.subr.bf16.mxu1 %v1368_v45 }
 0x2ac   : > { %1295 = vmatmul.mubr.msk.f32.vlgmr.msra.gmra.mrb[2].mxu1 %vm324_vm0, %v310_v15 }
 0x2ad   : > { %1371 = vmatpush3.bf16.msra.mxu1 %v1368_v45  ;;  %1297 = vmatprep.mubr.msk.f32.mxu1 %vm324_vm0, %v311_v16 }
 0x2ae   : > { %1373 = vmatprep.subr.bf16.mxu1 %v1372_v48 }
 0x2b0   : > { %1298 = vmatmul.mubr.msk.f32.gmra.mrb[4].mxu1 %vm324_vm0, %v312_v18 }
 0x2b1   : > { %1300 = vmatprep.mubr.msk.f32.mxu1 %vm324_vm0, %v313_v19  ;;  %1375 = vmatpush3.bf16.msra.mxu1 %v1372_v48 }
 0x2b2   : > { %1377 = vmatprep.subr.bf16.mxu1 %v1368_v45 }
 0x2b4   : > { %1301 = vmatmul.mubr.msk.f32.gmra.mrb[6].mxu1 %vm324_vm0, %v314_v20 }
 0x37b   : > { %v1289_v50 = vpop.f32.mrb[0].mxu1 }
 0x37c   : > { %v688_v51 = vpop.f32.mrb[1].mxu1  ;;  %v694_v53 = vadd.f32 %v1289_v50, %v1160_v49 }
 0x37d   : > { %v689_v52 = vadd.f32 %v1160_v49, %v688_v51 }
 0x37e   : > { %699 = vst.msk [vmem:[%s1609_s17 + $0x8] sm:$0xff] %vm697_vm2, %v694_v53 }
 0x37f   : > { %698 = vst.msk [vmem:[%s1609_s17] sm:$0xff] %vm697_vm2, %v689_v52  ;;  %v1296_v55 = vpop.f32.mrb[2].mxu1 }
 0x380   : > { %v777_v56 = vpop.f32.mrb[3].mxu1  ;;  %v783_v58 = vadd.f32 %v1296_v55, %v1166_v54 }
 0x381   : > { %v778_v57 = vadd.f32 %v1166_v54, %v777_v56 }
 0x383   : > { %1311 = vmatprep.mubr.msk.f32.mxu1 %vm442_vm1, %v778_v57 }
 0x384   : > { %1312 = vmatmul.mubr.msk.f32.vlgmr.msra.gmra.mrb[4].mxu1 %vm442_vm1, %v783_v58 }
 0x385   : > { %1379 = vmatpush3.bf16.msra.mxu1 %v1368_v45 }
 0x386   : > { %1381 = vmatprep.subr.bf16.mxu1 %v1372_v48 }
 0x389   : > { %1383 = vmatpush3.bf16.msra.mxu1 %v1372_v48 }
 0x457   : > { %v1313_v62 = vpop.f32.mrb[4].mxu1 }
 0x458   : > { %v883_v63 = vpop.f32.mrb[5].mxu1  ;;  %v1396_v1 = vadd.f32 %v1313_v62, %v1166_v54 }
 0x459   : > { %v1397_v0 = vadd.f32 %v1166_v54, %v883_v63 }
 0x45b   : > { %1322 = vmatprep.mubr.msk.f32.mxu1 %vm442_vm1, %v1397_v0 }
 0x45c   : > { %1323 = vmatmul.mubr.msk.f32.vlgmr.msra.gmra.mrb[6].mxu1 %vm442_vm1, %v1396_v1 }
 0x52f   : > { %v1324_v5 = vpop.f32.mrb[6].mxu1 }
 0x530   : > { %v964_v6 = vpop.f32.mrb[7].mxu1  ;;  %v1398_v8 = vadd.f32 %v1324_v5, %v1166_v54 }
 0x531   : > { %v1399_v7 = vadd.f32 %v1166_v54, %v964_v6 }
 0x533   : > { %1333 = vmatprep.mubr.msk.f32.mxu0 %vm442_vm1, %v1399_v7 }
 0x534   : > { %1334 = vmatmul.mubr.msk.f32.vlgmr.msra.gmra.mrb[6].mxu0 %vm442_vm1, %v1398_v8 }
 0x607   : > { %v1335_v10 = vpop.f32.mrb[6].mxu0 }
 0x608   : > { %v1058_v11 = vpop.f32.mrb[7].mxu0  ;;  %v1064_v13 = vadd.f32 %v1335_v10, %v1186_v9 }
 0x609   : > { %v1059_v12 = vadd.f32 %v1186_v9, %v1058_v11 }
 0x60b   : > { %1069 = vrot.lane.b32.xlu0 %v1059_v12, %s1459_s9 }
 0x60f   : > { %1071 = vrot.lane.b32.xlu0 %v1064_v13, %s1459_s9 }
 0x67d   : > { %v1070_v14 = vpop.permute.xlu0 %1069 }
 0x67e   : > { %1076 = vst.msk [vmem:[%s1609_s17] sm:$0xff] %vm1075_vm3, %v1070_v14 }
 0x681   : > { %v1072_v15 = vpop.permute.xlu0 %1071 }
 0x682   : > { %1077 = vst.msk [vmem:[%s1609_s17 + $0x8] sm:$0xff] %vm1075_vm3, %v1072_v15 }
 0x683 PF: > { %p13_p9 = scmp.ge.s32.totalorder %s1512_s25, 5   ;;  %s1656_s21 = smov %s1453_s22 }
 0x684   : > { %s1657_s22 = smov %s1521_s28  ;;  %s1658_s23 = smov %s1512_s25 }
 0x685   :  { %15 = sbr.rel (!%p13_p9) target bundleno = 2 (0x2), region = 122 }

</bundles_post_ra>
